<compile_context>
chip_gen: v7x
topology: tpu7x:2x2x1
jax: 0.10.0
libtpu: 0.0.40
codegen_flags: <defaults>
</compile_context>

<pallas_src>
import jax
import jax.numpy as jnp
from jax.experimental import pallas as pl
from jax.experimental.pallas import tpu as pltpu

# ---- problem sizes (small, consistent with the module) ----
B = 2              # batch
NPATHS = 3         # raw / 1st derivative / 2nd derivative signal paths
CIN = 4            # in_channels
INTER = 8          # intermediate_channels
L = 64             # sequence length
KSIZES = (3, 5, 7)
KMAX = max(KSIZES)
PAD1 = (KMAX - 1) // 2     # 'same' pad for stage 1 (weights zero-padded to KMAX)
NGATES = NPATHS * 3        # 9 gates total
EPS = 1e-5                 # BatchNorm eps (eval mode: running_mean=0, running_var=1)

BL = B * L                 # 128 -> lane-dense slabs (batch folded into lanes)
CROWS = NPATHS * CIN       # 12 stacked input rows  (row = path*CIN + c)
HROWS = NGATES * INTER     # 72 stacked stage-1 rows (row = gate*INTER + o)
K1 = KMAX * CROWS + 1      # 85  fused stage-1 contraction depth (incl. bias row)
K2 = 3 * HROWS + 1         # 217 fused stage-2 contraction depth (incl. bias row)


def composite_kernel(x_ref, w1_ref, w2_ref, wa_ref, out_ref):
    # x_ref  : [CROWS, BL + 2*PAD1]  lane-padded input, batch folded into lanes
    # w1_ref : [HROWS, K1]           fused stage-1 weights (taps flattened, bias column last)
    # w2_ref : [NGATES, K2]          fused stage-2 weights (taps flattened, bias column last)
    # wa_ref : [NGATES, B]           attention weights (tiny; lane-broadcast built in-kernel)
    # out_ref: [1, BL]

    x = x_ref[...]
    lane = jax.lax.broadcasted_iota(jnp.int32, (1, BL), 1)     # single hoisted iota
    lm = lane % L                                              # position within each batch elem
    ones_row = jnp.ones((1, BL), jnp.float32)

    # ---- stage 1: all 9 gates' Conv1d(CIN->INTER, k<=7, 'same') + folded BN(+bias) + ReLU ----
    # im2col stack of the 7 lane-shifted windows (masked at the batch boundary) + ones row,
    # then ONE fused matmul [72,85] x [85,128].
    wins = []
    for d in range(KMAX):
        off = d - PAD1
        win = x[:, d:d + BL]                         # lane-shifted window of the padded input
        if off < 0:
            win = jnp.where(lm >= -off, win, 0.0)    # zero taps crossing the batch boundary
        elif off > 0:
            win = jnp.where(lm < L - off, win, 0.0)
        wins.append(win)
    wins.append(ones_row)                            # bias row (bias folded into w1 column)
    stack1 = jnp.concatenate(wins, axis=0)           # [K1, BL]
    h = jnp.maximum(
        jnp.dot(w1_ref[...], stack1, preferred_element_type=jnp.float32), 0.0)  # [HROWS, BL]

    # ---- stage 2: all 9 gates' Conv1d(INTER->1, 3, 'same') + folded BN(+bias) + ReLU ----
    # ±1 windows of h via XLU lane rotation (no VMEM scratch); wrap-around values are
    # exactly the masked positions. ONE fused matmul [9,217] x [217,128].
    h_m1 = jnp.where(lm >= 1, pltpu.roll(h, shift=1, axis=1), 0.0)        # h[col-1]
    h_p1 = jnp.where(lm < L - 1, pltpu.roll(h, shift=BL - 1, axis=1), 0.0)  # h[col+1]
    stack2 = jnp.concatenate([h_m1, h, h_p1, ones_row], axis=0)           # [K2, BL]
    y = jnp.maximum(
        jnp.dot(w2_ref[...], stack2, preferred_element_type=jnp.float32), 0.0)  # [NGATES, BL]

    # ---- attention-weighted sum over the 9 stacked gate outputs ----
    # B == 2 -> one lane select builds the [NGATES, BL] broadcast of w_attn.
    wa = wa_ref[...]                                                      # [NGATES, B]
    wlane = jnp.where(lane < L, wa[:, 0:1], wa[:, 1:2])                   # [NGATES, BL]
    out_ref[...] = jnp.sum(wlane * y, axis=0, keepdims=True)


@jax.jit
def composite_signal_generator(x, w_attn, w1_fused, w2_fused):
    """x: [B, 3, CIN, L] ; w_attn: [B, NGATES] ; returns [B, 1, L]."""
    # layout plumbing: fold batch into the lane axis -> lane-dense 128-wide slabs.
    x_all = jnp.transpose(x, (1, 2, 0, 3)).reshape(CROWS, BL)
    x_pad = jnp.pad(x_all, ((0, 0), (PAD1, PAD1)))
    wa = jnp.transpose(w_attn)                                   # [NGATES, B] (tiny)

    cost = pl.CostEstimate(
        flops=2 * (HROWS * K1 + NGATES * K2) * BL,
        transcendentals=0,
        bytes_accessed=4 * (CROWS * (BL + 2 * PAD1) + HROWS * K1 + NGATES * K2
                            + NGATES * B + BL),
    )
    out_flat = pl.pallas_call(
        composite_kernel,
        out_shape=jax.ShapeDtypeStruct((1, BL), jnp.float32),
        cost_estimate=cost,
    )(x_pad, w1_fused, w2_fused, wa)
    return out_flat.reshape(B, 1, L)


def prepare_kernel_params(W1, s1, t1, W2, s2, t2):
    """Fold BN scale into the conv weights and build the fused im2col weight matrices.

    Returns:
      w1_fused: [HROWS, K1]   column = tap*CROWS + (path*CIN + c), last column = bias/shift
      w2_fused: [NGATES, K2]  column = tap*HROWS + (gate*INTER + o), last column = bias/shift
    """
    W1s = W1 * s1[:, :, :, None]                     # [9, INTER, CIN, KMAX]
    W2s = W2 * s2[:, :, :, None]                     # [9, 1, INTER, 3]
    w1_tap = jnp.zeros((KMAX, HROWS, CROWS), jnp.float32)
    w2_tap = jnp.zeros((3, NGATES, HROWS), jnp.float32)
    for g in range(NGATES):
        p = g // 3
        w1_tap = w1_tap.at[:, g * INTER:(g + 1) * INTER, p * CIN:(p + 1) * CIN].set(
            jnp.transpose(W1s[g], (2, 0, 1)))        # [KMAX, INTER, CIN]
        w2_tap = w2_tap.at[:, g, g * INTER:(g + 1) * INTER].set(
            jnp.transpose(W2s[g, 0], (1, 0)))        # [3, INTER]
    t1f = t1.reshape(HROWS, 1)
    t2f = t2.reshape(NGATES, 1)
    w1_fused = jnp.concatenate(
        [jnp.transpose(w1_tap, (1, 0, 2)).reshape(HROWS, KMAX * CROWS), t1f], axis=1)
    w2_fused = jnp.concatenate(
        [jnp.transpose(w2_tap, (1, 0, 2)).reshape(NGATES, 3 * HROWS), t2f], axis=1)
    return w1_fused, w2_fused


def init_params(key):
    """Deterministic synthetic parameters for the 9 gates (BN in eval mode)."""
    keys = jax.random.split(key, NGATES * 8)
    W1, s1, t1, W2, s2, t2 = [], [], [], [], [], []
    for g in range(NGATES):
        kk = [keys[g * 8 + i] for i in range(8)]
        k_actual = KSIZES[g % 3]
        w = 0.2 * jax.random.normal(kk[0], (INTER, CIN, k_actual), jnp.float32)
        off = (KMAX - k_actual) // 2
        w_full = jnp.zeros((INTER, CIN, KMAX), jnp.float32).at[:, :, off:off + k_actual].set(w)
        b1 = 0.1 * jax.random.normal(kk[1], (INTER,), jnp.float32)
        gamma1 = 1.0 + 0.1 * jax.random.normal(kk[2], (INTER,), jnp.float32)
        beta1 = 0.1 * jax.random.normal(kk[3], (INTER,), jnp.float32)
        sc1 = gamma1 / jnp.sqrt(1.0 + EPS)           # BN eval: mean=0, var=1
        sh1 = b1 * sc1 + beta1
        w2 = 0.2 * jax.random.normal(kk[4], (1, INTER, 3), jnp.float32)
        b2 = 0.1 * jax.random.normal(kk[5], (1,), jnp.float32)
        gamma2 = 1.0 + 0.1 * jax.random.normal(kk[6], (1,), jnp.float32)
        beta2 = 0.1 * jax.random.normal(kk[7], (1,), jnp.float32)
        sc2 = gamma2 / jnp.sqrt(1.0 + EPS)
        sh2 = b2 * sc2 + beta2
        W1.append(w_full)
        s1.append(sc1[:, None]); t1.append(sh1[:, None])
        W2.append(w2)
        s2.append(sc2[:, None]); t2.append(sh2[:, None])
    return (jnp.stack(W1), jnp.stack(s1), jnp.stack(t1),
            jnp.stack(W2), jnp.stack(s2), jnp.stack(t2))


def reference(x, w_attn, W1, s1, t1, W2, s2, t2):
    """Pure-JAX reference of the PyTorch forward (attention disabled -> w given)."""
    xp = jnp.pad(x, ((0, 0), (0, 0), (0, 0), (PAD1, PAD1)))
    out = jnp.zeros((B, 1, L), jnp.float32)
    for g in range(NGATES):
        xin = xp[:, g // 3]                              # [B, CIN, L+2*PAD1]
        acc = jnp.zeros((B, INTER, L), jnp.float32)
        for k in range(KMAX):
            acc = acc + jnp.einsum('oc,bcl->bol', W1[g, :, :, k], xin[:, :, k:k + L])
        h = jnp.maximum(acc * s1[g][None] + t1[g][None], 0.0)
        hp = jnp.pad(h, ((0, 0), (0, 0), (1, 1)))
        acc2 = jnp.zeros((B, 1, L), jnp.float32)
        for k in range(3):
            acc2 = acc2 + jnp.einsum('oc,bcl->bol', W2[g, :, :, k], hp[:, :, k:k + L])
        y = jnp.maximum(acc2 * s2[g][None] + t2[g][None], 0.0)
        out = out + w_attn[:, g][:, None, None] * y
    return out


if __name__ == "__main__":
    key = jax.random.PRNGKey(0)
    kx, kp = jax.random.split(key)
    x = jax.random.normal(kx, (B, NPATHS, CIN, L), jnp.float32)
    W1, s1, t1, W2, s2, t2 = init_params(kp)
    # attention subnet disabled -> PyTorch fallback: w = ones((B, out_dim=9))
    w_attn = jnp.ones((B, NGATES), jnp.float32)

    w1_fused, w2_fused = prepare_kernel_params(W1, s1, t1, W2, s2, t2)

    out = composite_signal_generator(x, w_attn, w1_fused, w2_fused)
    out = jax.block_until_ready(out)

    ref = reference(x, w_attn, W1, s1, t1, W2, s2, t2)
    assert out.shape == (B, 1, L)
    err = float(jnp.max(jnp.abs(out - ref)))
    assert jnp.allclose(out, ref, atol=1e-4, rtol=1e-4), err
    print("KERNEL_OK")
</pallas_src>

<mosaic_0001>
module attributes {stable_mosaic.version = 11 : i64} {
  func.func @composite_kernel(%arg0: memref<12x134xf32, #tpu.memory_space<vmem>>, %arg1: memref<72x85xf32, #tpu.memory_space<vmem>>, %arg2: memref<9x217xf32, #tpu.memory_space<vmem>>, %arg3: memref<9x2xf32, #tpu.memory_space<vmem>>, %arg4: memref<1x128xf32, #tpu.memory_space<vmem>>) attributes {dimension_semantics = [], scalar_prefetch = 0 : i64, scratch_operands = 0 : i64, tpu.core_type = #tpu.core_type<tc>} {
    %c0 = arith.constant 0 : index
    %c0_0 = arith.constant 0 : index
    %0 = vector.load %arg0[%c0, %c0_0] : memref<12x134xf32, #tpu.memory_space<vmem>>, vector<12x134xf32>
    %1 = tpu.iota {dimensions = array<i32: 1>} : vector<1x128xi32>
    %c64_i32 = arith.constant 64 : i32
    %c0_i32 = arith.constant 0 : i32
    %2 = arith.cmpi eq, %c64_i32, %c0_i32 : i32
    %c1_i32 = arith.constant 1 : i32
    %3 = arith.select %2, %c1_i32, %c64_i32 : i32
    %4 = vector.broadcast %3 : i32 to vector<1x128xi32>
    %5 = arith.remsi %1, %4 : vector<1x128xi32>
    %c0_i32_1 = arith.constant 0 : i32
    %6 = vector.broadcast %c0_i32_1 : i32 to vector<1x128xi32>
    %7 = arith.cmpi ne, %5, %6 : vector<1x128xi32>
    %c0_i32_2 = arith.constant 0 : i32
    %8 = vector.broadcast %c0_i32_2 : i32 to vector<1x128xi32>
    %9 = arith.cmpi slt, %5, %8 : vector<1x128xi32>
    %c0_i32_3 = arith.constant 0 : i32
    %10 = arith.cmpi slt, %3, %c0_i32_3 : i32
    %11 = vector.broadcast %10 : i1 to vector<1x128xi1>
    %12 = vector.broadcast %11 : vector<1x128xi1> to vector<1x128xi1>
    %13 = arith.xori %9, %12 : vector<1x128xi1>
    %14 = arith.andi %13, %7 : vector<1x128xi1>
    %15 = vector.broadcast %3 : i32 to vector<1x128xi32>
    %16 = arith.addi %5, %15 : vector<1x128xi32>
    %17 = arith.select %14, %16, %5 : vector<1x128xi1>, vector<1x128xi32>
    %cst = arith.constant 1.000000e+00 : f32
    %18 = vector.broadcast %cst : f32 to vector<1x128xf32>
    %19 = vector.extract_strided_slice %0 {offsets = [0, 0], sizes = [12, 128], strides = [1, 1]} : vector<12x134xf32> to vector<12x128xf32>
    %c3_i32 = arith.constant 3 : i32
    %20 = vector.broadcast %c3_i32 : i32 to vector<1x128xi32>
    %21 = arith.cmpi sge, %17, %20 : vector<1x128xi32>
    %cst_4 = arith.constant 0.000000e+00 : f32
    %22 = vector.shape_cast %21 : vector<1x128xi1> to vector<1x128xi1>
    %23 = vector.broadcast %22 : vector<1x128xi1> to vector<12x128xi1>
    %24 = vector.broadcast %cst_4 : f32 to vector<12x128xf32>
    %25 = arith.select %23, %19, %24 : vector<12x128xi1>, vector<12x128xf32>
    %26 = vector.extract_strided_slice %0 {offsets = [0, 1], sizes = [12, 128], strides = [1, 1]} : vector<12x134xf32> to vector<12x128xf32>
    %c2_i32 = arith.constant 2 : i32
    %27 = vector.broadcast %c2_i32 : i32 to vector<1x128xi32>
    %28 = arith.cmpi sge, %17, %27 : vector<1x128xi32>
    %cst_5 = arith.constant 0.000000e+00 : f32
    %29 = vector.shape_cast %28 : vector<1x128xi1> to vector<1x128xi1>
    %30 = vector.broadcast %29 : vector<1x128xi1> to vector<12x128xi1>
    %31 = vector.broadcast %cst_5 : f32 to vector<12x128xf32>
    %32 = arith.select %30, %26, %31 : vector<12x128xi1>, vector<12x128xf32>
    %33 = vector.extract_strided_slice %0 {offsets = [0, 2], sizes = [12, 128], strides = [1, 1]} : vector<12x134xf32> to vector<12x128xf32>
    %c1_i32_6 = arith.constant 1 : i32
    %34 = vector.broadcast %c1_i32_6 : i32 to vector<1x128xi32>
    %35 = arith.cmpi sge, %17, %34 : vector<1x128xi32>
    %cst_7 = arith.constant 0.000000e+00 : f32
    %36 = vector.shape_cast %35 : vector<1x128xi1> to vector<1x128xi1>
    %37 = vector.broadcast %36 : vector<1x128xi1> to vector<12x128xi1>
    %38 = vector.broadcast %cst_7 : f32 to vector<12x128xf32>
    %39 = arith.select %37, %33, %38 : vector<12x128xi1>, vector<12x128xf32>
    %40 = vector.extract_strided_slice %0 {offsets = [0, 3], sizes = [12, 128], strides = [1, 1]} : vector<12x134xf32> to vector<12x128xf32>
    %41 = vector.extract_strided_slice %0 {offsets = [0, 4], sizes = [12, 128], strides = [1, 1]} : vector<12x134xf32> to vector<12x128xf32>
    %c63_i32 = arith.constant 63 : i32
    %42 = vector.broadcast %c63_i32 : i32 to vector<1x128xi32>
    %43 = arith.cmpi slt, %17, %42 : vector<1x128xi32>
    %cst_8 = arith.constant 0.000000e+00 : f32
    %44 = vector.shape_cast %43 : vector<1x128xi1> to vector<1x128xi1>
    %45 = vector.broadcast %44 : vector<1x128xi1> to vector<12x128xi1>
    %46 = vector.broadcast %cst_8 : f32 to vector<12x128xf32>
    %47 = arith.select %45, %41, %46 : vector<12x128xi1>, vector<12x128xf32>
    %48 = vector.extract_strided_slice %0 {offsets = [0, 5], sizes = [12, 128], strides = [1, 1]} : vector<12x134xf32> to vector<12x128xf32>
    %c62_i32 = arith.constant 62 : i32
    %49 = vector.broadcast %c62_i32 : i32 to vector<1x128xi32>
    %50 = arith.cmpi slt, %17, %49 : vector<1x128xi32>
    %cst_9 = arith.constant 0.000000e+00 : f32
    %51 = vector.shape_cast %50 : vector<1x128xi1> to vector<1x128xi1>
    %52 = vector.broadcast %51 : vector<1x128xi1> to vector<12x128xi1>
    %53 = vector.broadcast %cst_9 : f32 to vector<12x128xf32>
    %54 = arith.select %52, %48, %53 : vector<12x128xi1>, vector<12x128xf32>
    %55 = vector.extract_strided_slice %0 {offsets = [0, 6], sizes = [12, 128], strides = [1, 1]} : vector<12x134xf32> to vector<12x128xf32>
    %c61_i32 = arith.constant 61 : i32
    %56 = vector.broadcast %c61_i32 : i32 to vector<1x128xi32>
    %57 = arith.cmpi slt, %17, %56 : vector<1x128xi32>
    %cst_10 = arith.constant 0.000000e+00 : f32
    %58 = vector.shape_cast %57 : vector<1x128xi1> to vector<1x128xi1>
    %59 = vector.broadcast %58 : vector<1x128xi1> to vector<12x128xi1>
    %60 = vector.broadcast %cst_10 : f32 to vector<12x128xf32>
    %61 = arith.select %59, %55, %60 : vector<12x128xi1>, vector<12x128xf32>
    %62 = tpu.concatenate %25, %32, %39, %40, %47, %54, %61, %18 in 0 : vector<12x128xf32>, vector<12x128xf32>, vector<12x128xf32>, vector<12x128xf32>, vector<12x128xf32>, vector<12x128xf32>, vector<12x128xf32>, vector<1x128xf32> -> vector<85x128xf32>
    %c0_11 = arith.constant 0 : index
    %c0_12 = arith.constant 0 : index
    %63 = vector.load %arg1[%c0_11, %c0_12] : memref<72x85xf32, #tpu.memory_space<vmem>>, vector<72x85xf32>
    %cst_13 = arith.constant dense<0.000000e+00> : vector<72x128xf32>
    %64 = tpu.matmul %63, %62, %cst_13 {dimension_numbers = #tpu.dot_dimension_numbers<[1], [0], [0], [1], [0, 0, 1, 1], [], []>} : vector<72x85xf32>, vector<85x128xf32>, vector<72x128xf32> -> vector<72x128xf32>
    %cst_14 = arith.constant 0.000000e+00 : f32
    %65 = vector.broadcast %cst_14 : f32 to vector<72x128xf32>
    %66 = arith.maximumf %64, %65 : vector<72x128xf32>
    %c1_i32_15 = arith.constant 1 : i32
    %67 = vector.broadcast %c1_i32_15 : i32 to vector<1x128xi32>
    %68 = arith.cmpi sge, %17, %67 : vector<1x128xi32>
    %c1_i32_16 = arith.constant 1 : i32
    %69 = tpu.dynamic_rotate %66 by %c1_i32_16 dim 1 : vector<72x128xf32>, i32 -> vector<72x128xf32>
    %cst_17 = arith.constant 0.000000e+00 : f32
    %70 = vector.shape_cast %68 : vector<1x128xi1> to vector<1x128xi1>
    %71 = vector.broadcast %70 : vector<1x128xi1> to vector<72x128xi1>
    %72 = vector.broadcast %cst_17 : f32 to vector<72x128xf32>
    %73 = arith.select %71, %69, %72 : vector<72x128xi1>, vector<72x128xf32>
    %c63_i32_18 = arith.constant 63 : i32
    %74 = vector.broadcast %c63_i32_18 : i32 to vector<1x128xi32>
    %75 = arith.cmpi slt, %17, %74 : vector<1x128xi32>
    %c127_i32 = arith.constant 127 : i32
    %76 = tpu.dynamic_rotate %66 by %c127_i32 dim 1 : vector<72x128xf32>, i32 -> vector<72x128xf32>
    %cst_19 = arith.constant 0.000000e+00 : f32
    %77 = vector.shape_cast %75 : vector<1x128xi1> to vector<1x128xi1>
    %78 = vector.broadcast %77 : vector<1x128xi1> to vector<72x128xi1>
    %79 = vector.broadcast %cst_19 : f32 to vector<72x128xf32>
    %80 = arith.select %78, %76, %79 : vector<72x128xi1>, vector<72x128xf32>
    %81 = tpu.concatenate %73, %66, %80, %18 in 0 : vector<72x128xf32>, vector<72x128xf32>, vector<72x128xf32>, vector<1x128xf32> -> vector<217x128xf32>
    %c0_20 = arith.constant 0 : index
    %c0_21 = arith.constant 0 : index
    %82 = vector.load %arg2[%c0_20, %c0_21] : memref<9x217xf32, #tpu.memory_space<vmem>>, vector<9x217xf32>
    %cst_22 = arith.constant dense<0.000000e+00> : vector<9x128xf32>
    %83 = tpu.matmul %82, %81, %cst_22 {dimension_numbers = #tpu.dot_dimension_numbers<[1], [0], [0], [1], [0, 0, 1, 1], [], []>} : vector<9x217xf32>, vector<217x128xf32>, vector<9x128xf32> -> vector<9x128xf32>
    %cst_23 = arith.constant 0.000000e+00 : f32
    %84 = vector.broadcast %cst_23 : f32 to vector<9x128xf32>
    %85 = arith.maximumf %83, %84 : vector<9x128xf32>
    %c0_24 = arith.constant 0 : index
    %c0_25 = arith.constant 0 : index
    %86 = vector.load %arg3[%c0_24, %c0_25] : memref<9x2xf32, #tpu.memory_space<vmem>>, vector<9x2xf32>
    %c64_i32_26 = arith.constant 64 : i32
    %87 = vector.broadcast %c64_i32_26 : i32 to vector<1x128xi32>
    %88 = arith.cmpi slt, %1, %87 : vector<1x128xi32>
    %89 = vector.extract_strided_slice %86 {offsets = [0, 0], sizes = [9, 1], strides = [1, 1]} : vector<9x2xf32> to vector<9x1xf32>
    %90 = vector.extract_strided_slice %86 {offsets = [0, 1], sizes = [9, 1], strides = [1, 1]} : vector<9x2xf32> to vector<9x1xf32>
    %91 = vector.shape_cast %88 : vector<1x128xi1> to vector<1x128xi1>
    %92 = vector.broadcast %91 : vector<1x128xi1> to vector<9x128xi1>
    %93 = vector.shape_cast %89 : vector<9x1xf32> to vector<9x1xf32>
    %94 = vector.broadcast %93 : vector<9x1xf32> to vector<9x128xf32>
    %95 = vector.shape_cast %90 : vector<9x1xf32> to vector<9x1xf32>
    %96 = vector.broadcast %95 : vector<9x1xf32> to vector<9x128xf32>
    %97 = arith.select %92, %94, %96 : vector<9x128xi1>, vector<9x128xf32>
    %98 = arith.mulf %97, %85 : vector<9x128xf32>
    %cst_27 = arith.constant dense<0.000000e+00> : vector<128xf32>
    %99 = vector.multi_reduction <add>, %98, %cst_27 [0] : vector<9x128xf32> to vector<128xf32>
    %100 = vector.shape_cast %99 : vector<128xf32> to vector<1x128xf32>
    %c0_28 = arith.constant 0 : index
    %c0_29 = arith.constant 0 : index
    %101 = vector.load %arg4[%c0_28, %c0_29] : memref<1x128xf32, #tpu.memory_space<vmem>>, vector<1x128xf32>
    tpu.vector_store %arg4[%c0_28, %c0_29], %100 {strides = array<i32>} : memref<1x128xf32, #tpu.memory_space<vmem>>, vector<1x128xf32>,
    return
  }
}

</mosaic_0001>

<bundles_post_ra>
// kernel: composite_signal_generator.1
= control target key start
LH: loop header
LB: loop body
LE: loop exit
PB: predicated region body
PF: predicated region fallthrough
CT: control target
= control target key end

     0   :  { %s805_s23 = smov 126   ;;  %s806_s24 = smov 127   ;;  %vm136_vm0 = vcmask 1043456   ;;  %v807_v10 = vmov 0.0|0.0   ;;  %vm811_vm1 = vmmov 0   ;;  %v812_v15 = vmov 0.0   ;;  %s1072_s0 = inlined_call_operand.vmem [shape: f32[12,134], index: 0, kind: input, shape index: {}]   ;;  %s1073_s1 = inlined_call_operand.vmem [shape: f32[72,85], index: 1, kind: input, shape index: {}]   ;;  %s1074_s2 = inlined_call_operand.vmem [shape: f32[9,217], index: 2, kind: input, shape index: {}]   ;;  %s1075_s3 = inlined_call_operand.vmem [shape: f32[9,2], index: 3, kind: input, shape index: {}]   ;;  %s1076_s4 = inlined_call_operand.vmem [shape: f32[1,128], index: 4, kind: output, shape index: {}]  }
   0x1   :  { %v847_v0 = vld [vmem:[%s1072_s0] sm:$0xff]  ;;  %v18_v1 = vld [vmem:[%s1072_s0 + $0x8] sm:$0xff]  ;;  %v19_v2 = vld [vmem:[%s1072_s0 + $0x10] sm:$0xf]  ;;  %622 = vmatprep.subr.bf16.mxu0 %v807_v10  ;;  %641 = vmatprep.subr.bf16.mxu1 %v807_v10  ;;  %s809_s25 = smov 125   ;;  %s810_s26 = smov 124   ;;  %v21_v16 = vlaneseq }
   0x2   :  { %v717_v3 = vpack.i.bf16 %v18_v1, %v847_v0  ;;  %v20_v4 = vld [vmem:[%s1072_s0 + $0x18] sm:$0xf]  ;;  %v142_v6 = vrot.slane %v847_v0, 4  ;;  %v143_v7 = vrot.slane %v18_v1, 4  ;;  %v144_v8 = vrot.slane %v19_v2, 4  ;;  %s808_s0 = smov 123   ;;  %595 = vmatprep.mubr.msk.f32.mxu0 %vm811_vm1, %v812_v15 }
   0x3   :  { %v722_v5 = vpack.i.bf16 %v20_v4, %v19_v2  ;;  %v146_v9 = vrot.slane %v20_v4, 4  ;;  %s813_s27 = smov 122   ;;  %v868_v17 = vand.u32 127, %v21_v16  ;;  %vm55_vm2 = vcmask 1039360   ;;  %s815_s20 = smov 1  }
   0x4   :  { %718 = vrot.lane.b32.xlu1 %v717_v3, %s805_s23  ;;  %708 = vrot.lane.b32.xlu0 %v717_v3, %s806_s24  ;;  %v727_v11 = vpack.i.bf16 %v143_v7, %v142_v6  ;;  %v145_v12 = vsel %vm136_vm0, %v142_v6, %v144_v8  ;;  %vm73_vm5 = vcmask 1031168   ;;  %vm109_vm6 = vcmask 1006592  }
   0x5   :  { %v147_v13 = vsel %vm136_vm0, %v143_v7, %v146_v9  ;;  %v871_v18 = vand.u32 63, %v868_v17  ;;  %vm814_vm7 = vmmov 1   ;;  %vm156_vm9 = vcmask 1022976  }
   0x6   :  { %v737_v14 = vpack.i.bf16 %v147_v13, %v145_v12  ;;  %vm91_vm11 = vcmask 1014784   ;;  %vm127_vm15 = vcmask 998400  }
   0x7   :  { %vm40_vm3 = vcmp.ge.s32.totalorder %v871_v18, 2  ;;  %vm35_vm4 = vcmp.ge.s32.totalorder %v871_v18, 3  ;;  %vm98_vm10 = vcmp.lt.s32.totalorder %v871_v18, 62  ;;  %vm62_vm12 = vcmp.ge.s32.totalorder %v871_v18, 1 }
   0x8   :  { %723 = vrot.lane.b32.xlu1 %v722_v5, %s805_s23  ;;  %713 = vrot.lane.b32.xlu0 %v722_v5, %s806_s24  ;;  %v39_v27 = vsel %vm35_vm4, %v19_v2, 0.0  ;;  %vm624_vm8 = vmpackc.low %vm814_vm7, %vm35_vm4  ;;  %vm80_vm14 = vcmp.lt.s32.totalorder %v871_v18, 63 }
   0x9   :  { %vm628_vm13 = vmpackc.low %vm62_vm12, %vm814_vm7 }
   0xc   :  { %733 = vrot.lane.b32.xlu1 %v717_v3, %s808_s0  ;;  %728 = vrot.lane.b32.xlu0 %v727_v11, %s809_s25 }
  0x10   :  { %743 = vrot.lane.b32.xlu1 %v722_v5, %s810_s26  ;;  %738 = vrot.lane.b32.xlu0 %v737_v14, %s809_s25 }
  0x14   :  { %753 = vrot.lane.b32.xlu1 %v722_v5, %s808_s0  ;;  %748 = vrot.lane.b32.xlu0 %v717_v3, %s810_s26 }
  0x18   :  { %758 = vrot.lane.b32.xlu0 %v717_v3, %s813_s27  ;;  %123 = vrot.lane.b32.xlu1 %v19_v2, %s813_s27 }
  0x1c   :  { %125 = vrot.lane.b32.xlu0 %v20_v4, %s813_s27 }
  0x76   :  { %v719_v19 = vpop.permute.xlu1 %718  ;;  %v709_v20 = vpop.permute.xlu0 %708 }
  0x77   :  { %v711_v21 = vunpack.i.h.bf16 %v709_v20  ;;  %v710_v22 = vunpack.i.l.bf16 %v709_v20  ;;  %v721_v31 = vunpack.i.h.bf16 %v719_v19  ;;  %v720_v32 = vunpack.i.l.bf16 %v719_v19 }
  0x79   :  { %v56_v23 = vsel %vm55_vm2, %v710_v22, %v711_v21  ;;  %v74_v46 = vsel %vm73_vm5, %v720_v32, %v721_v31  ;;  %v174_v31 = vld [vmem:[%s1073_s1 + $0x10] sm:$0xff]  ;;  %v175_v32 = vld [vmem:[%s1073_s1 + $0x18] sm:$0xff] }
  0x7a   :  { %v60_v24 = vsel %vm40_vm3, %v56_v23, 0.0  ;;  %v724_v25 = vpop.permute.xlu1 %723  ;;  %v714_v26 = vpop.permute.xlu0 %713 }
  0x7b   :  { %v137_v28 = vrot.slane %v60_v24, 4  ;;  %v716_v29 = vunpack.i.h.bf16 %v714_v26  ;;  %v715_v30 = vunpack.i.l.bf16 %v714_v26  ;;  %v726_v34 = vunpack.i.h.bf16 %v724_v25 }
  0x7c   :  { %v725_v35 = vunpack.i.l.bf16 %v724_v25 }
  0x7d   :  { %v168_v33 = vsel %vm136_vm0, %v39_v27, %v137_v28  ;;  %v57_v36 = vsel %vm55_vm2, %v715_v30, %v716_v29  ;;  %vm635_vm2 = vmpackc.low %vm814_vm7, %vm80_vm14  ;;  %v172_v29 = vld [vmem:[%s1073_s1] sm:$0xff]  ;;  %v173_v30 = vld [vmem:[%s1073_s1 + $0x8] sm:$0xff] }
  0x7e   :  { %v734_v37 = vpop.permute.xlu1 %733  ;;  %v729_v38 = vpop.permute.xlu0 %728  ;;  %v623_v39 = vpack.c.bf16 %v168_v33, %v847_v0  ;;  %v61_v40 = vsel %vm40_vm3, %v57_v36, 0.0  ;;  %v75_v47 = vsel %vm73_vm5, %v725_v35, %v726_v34  ;;  %vm116_vm3 = vcmp.lt.s32.totalorder %v871_v18, 61  ;;  %v176_v33 = vld [vmem:[%s1073_s1 + $0x20] sm:$0xff]  ;;  %v177_v34 = vld [vmem:[%s1073_s1 + $0x28] sm:$0xff]  ;;  %v178_v35 = vld [vmem:[%s1073_s1 + $0x30] sm:$0xff] }
  0x7f   :  { %v736_v41 = vunpack.i.h.bf16 %v734_v37  ;;  %v735_v42 = vunpack.i.l.bf16 %v734_v37  ;;  %v731_v43 = vunpack.i.h.bf16 %v729_v38  ;;  %v138_v44 = vrot.slane %v61_v40, 4  ;;  %vm639_vm4 = vmpackc.low %vm116_vm3, %vm814_vm7  ;;  %v179_v36 = vld [vmem:[%s1073_s1 + $0x38] sm:$0xff]  ;;  %v180_v37 = vld [vmem:[%s1073_s1 + $0x40] sm:$0xff] }
  0x80   :  { %v730_v45 = vunpack.i.l.bf16 %v729_v38  ;;  %625 = vmatpush3.bf16.msk.msra.mxu0 %vm624_vm8, %v623_v39  ;;  %v79_v60 = vsel %vm62_vm12, %v75_v47, 0.0  ;;  %vm209_vm5 = vcmask 1044480   ;;  %vm659_vm8 = vmpackc.low %vm814_vm7, %vm62_vm12 }
  0x81   :  { %626 = vmatprep.subr.bf16.mxu0 %v807_v10  ;;  %v110_v48 = vsel %vm109_vm6, %v735_v42, %v736_v41  ;;  %v139_v51 = vsel %vm136_vm0, %v137_v28, %v138_v44  ;;  %vm1038_vm7 = vmpackc.low %vm80_vm14, %vm80_vm14 }
  0x82   :  { %v744_v49 = vpop.permute.xlu1 %743  ;;  %v739_v50 = vpop.permute.xlu0 %738  ;;  %v157_v52 = vsel %vm156_vm9, %v730_v45, %v731_v43  ;;  %v627_v57 = vpack.c.bf16 %v74_v46, %v139_v51  ;;  %v114_v58 = vsel %vm98_vm10, %v110_v48, 0.0 }
  0x83   :  { %v746_v53 = vunpack.i.h.bf16 %v744_v49  ;;  %v745_v54 = vunpack.i.l.bf16 %v744_v49  ;;  %v741_v55 = vunpack.i.h.bf16 %v739_v50  ;;  %v740_v56 = vunpack.i.l.bf16 %v739_v50 }
  0x84   :  { %629 = vmatpush3.bf16.msk.msra.mxu0 %vm628_vm13, %v627_v57  ;;  %v169_v0 = vsel %vm136_vm0, %v79_v60, %v157_v52  ;;  %v163_v5 = vrot.slane %v114_v58, 4 }
  0x85   :  { %v93_v59 = vsel %vm91_vm11, %v745_v54, %v746_v53  ;;  %v158_v63 = vsel %vm156_vm9, %v740_v56, %v741_v55  ;;  %630 = vmatprep.subr.bf16.mxu0 %v807_v10  ;;  %vm397_vm9 = vcmask 1040384  }
  0x86   :  { %v754_v61 = vpop.permute.xlu1 %753  ;;  %v749_v62 = vpop.permute.xlu0 %748  ;;  %v97_v1 = vsel %vm80_vm14, %v93_v59, 0.0  ;;  %v631_v7 = vpack.c.bf16 %v158_v63, %v169_v0 }
  0x87   :  { %v756_v2 = vunpack.i.h.bf16 %v754_v61  ;;  %v755_v3 = vunpack.i.l.bf16 %v754_v61  ;;  %v751_v4 = vunpack.i.h.bf16 %v749_v62  ;;  %v750_v6 = vunpack.i.l.bf16 %v749_v62 }
  0x88   :  { %v170_v11 = vsel %vm136_vm0, %v97_v1, %v163_v5  ;;  %632 = vmatpush3.bf16.msra.mxu0 %v631_v7 }
  0x89   :  { %v111_v8 = vsel %vm109_vm6, %v755_v3, %v756_v2  ;;  %v92_v12 = vsel %vm91_vm11, %v750_v6, %v751_v4  ;;  %633 = vmatprep.subr.bf16.mxu0 %v807_v10  ;;  %vm181_vm6 = vcmask 695296   ;;  %vm480_vm11 = vcmp.lt.s32.totalorder %v868_v17, 64 }
  0x8a   :  { %v115_v9 = vsel %vm98_vm10, %v111_v8, 0.0  ;;  %v759_v13 = vpop.permute.xlu0 %758  ;;  %v634_v16 = vpack.c.bf16 %v170_v11, %v92_v12  ;;  %v124_v21 = vpop.permute.xlu1 %123  ;;  %v387_v8 = vld [vmem:[%s1074_s2 + $0x8] sm:$0xff]  ;;  %v817_v12 = vmov 1   ;;  %vm691_vm10 = vmpackc.low %vm397_vm9, %vm80_vm14 }
  0x8b   :  { %v164_v14 = vrot.slane %v115_v9, 4  ;;  %v761_v19 = vunpack.i.h.bf16 %v759_v13  ;;  %v760_v20 = vunpack.i.l.bf16 %v759_v13  ;;  %v816_v9 = vmov 0   ;;  %v479_v11 = vld [vmem:[%s1075_s3 + $0x8] sm:$0x1]  ;;  %803 = vset.pattern.permute.xlu0 %v817_v12  ;;  %v478_v13 = vld [vmem:[%s1075_s3] sm:$0xff] }
  0x8c   :  { %636 = vmatpush3.bf16.msk.msra.mxu0 %vm635_vm2, %v634_v16  ;;  %802 = vset.pattern.permute.xlu1 %v816_v9 }
  0x8d   :  { %v165_v22 = vsel %vm136_vm0, %v163_v5, %v164_v14  ;;  %v128_v23 = vsel %vm127_vm15, %v760_v20, %v761_v19  ;;  %637 = vmatprep.subr.bf16.mxu0 %v807_v10 }
  0x8e   :  { %v126_v24 = vpop.permute.xlu0 %125  ;;  %v638_v25 = vpack.c.bf16 %v128_v23, %v165_v22 }
  0x8f   :  { %v129_v26 = vsel %vm127_vm15, %v124_v21, %v126_v24 }
  0x90   :  { %v133_v27 = vsel %vm116_vm3, %v129_v26, 0.0  ;;  %640 = vmatpush3.bf16.msk.msra.mxu0 %vm639_vm4, %v638_v25 }
  0x91   :  { %593 = vmatprep.subr.mxu0 %v812_v15  ;;  %v171_v28 = vsel %vm136_vm0, %v133_v27, 1.0  ;;  %vm390_vm0 = vcmask 728064  }
  0x92   :  { %551 = vmatprep.mubr.msk.f32.mxu1 %vm390_vm0, %v387_v8 }
  0x94   :  { %594 = vmatpush3.msk.msra.mxu0 %vm209_vm5, %v171_v28 }
  0x95   :  { %596 = vmatmul.mubr.msk.f32.vlgmr.msra.gmra.mrb[0].mxu0 %vm181_vm6, %v172_v29 }
  0x96   :  { %598 = vmatprep.mubr.msk.f32.mxu0 %vm811_vm1, %v812_v15 }
  0x99   :  { %599 = vmatmul.mubr.msk.f32.gmra.mrb[2].mxu0 %vm181_vm6, %v173_v30 }
  0x9a   :  { %601 = vmatprep.mubr.msk.f32.mxu0 %vm811_vm1, %v812_v15 }
  0x9d   :  { %602 = vmatmul.mubr.msk.f32.gmra.mrb[4].mxu0 %vm181_vm6, %v174_v31 }
  0x9e   :  { %604 = vmatprep.mubr.msk.f32.mxu0 %vm811_vm1, %v812_v15 }
  0xa1   :  { %605 = vmatmul.mubr.msk.f32.gmra.mrb[6].mxu0 %vm181_vm6, %v175_v32 }
  0xa2   :  { %607 = vmatprep.mubr.msk.f32.mxu0 %vm811_vm1, %v812_v15 }
  0xa5   :  { %608 = vmatmul.mubr.msk.f32.gmra.mrb[8].mxu0 %vm181_vm6, %v176_v33 }
  0xa6   :  { %610 = vmatprep.mubr.msk.f32.mxu0 %vm811_vm1, %v812_v15 }
  0xa9   :  { %611 = vmatmul.mubr.msk.f32.gmra.mrb[10].mxu0 %vm181_vm6, %v177_v34 }
  0xaa   :  { %613 = vmatprep.mubr.msk.f32.mxu0 %vm811_vm1, %v812_v15 }
  0xad   :  { %614 = vmatmul.mubr.msk.f32.gmra.mrb[12].mxu0 %vm181_vm6, %v178_v35 }
  0xae   :  { %616 = vmatprep.mubr.msk.f32.mxu0 %vm811_vm1, %v812_v15 }
  0xb1   :  { %617 = vmatmul.mubr.msk.f32.gmra.mrb[14].mxu0 %vm181_vm6, %v179_v36 }
  0xb2   :  { %619 = vmatprep.mubr.msk.f32.mxu0 %vm811_vm1, %v812_v15  ;;  %vm1006_vm1 = vmpackc.low %vm62_vm12, %vm62_vm12 }
  0xb5   :  { %620 = vmatmul.mubr.msk.f32.gmra.mrb[16].mxu0 %vm181_vm6, %v180_v37 }
 0x168   :  { %v977_v38 = vpop.f32.mrb[0].mxu0 }
 0x169   :  { %v597_v39 = vpop.f32.mrb[1].mxu0  ;;  %v323_v41 = vmax.f32 %v977_v38, 0.0 }
 0x16c   :  { %v284_v40 = vpop.f32.mrb[2].mxu0 }
 0x16d   :  { %v324_v42 = vmax.f32 %v284_v40, 0.0  ;;  %v600_v43 = vpop.f32.mrb[3].mxu0 }
 0x16f   :  { %v762_v44 = vpack.i.bf16 %v324_v42, %v323_v41 }
 0x170   :  { %v289_v45 = vpop.f32.mrb[4].mxu0 }
 0x171   :  { %v325_v46 = vmax.f32 %v289_v45, 0.0  ;;  %763 = vrot.lane.b32.xlu1 %v762_v44, %s815_s20  ;;  %v603_v15 = vpop.f32.mrb[5].mxu0 }
 0x173   :  { %v982_v47 = vpack.c.bf16 %v325_v46, %v324_v42 }
 0x174   :  { %v294_v48 = vpop.f32.mrb[6].mxu0 }
 0x175   :  { %v326_v49 = vmax.f32 %v294_v48, 0.0  ;;  %v606_v50 = vpop.f32.mrb[7].mxu0 }
 0x177   :  { %v767_v51 = vpack.i.bf16 %v326_v49, %v325_v46 }
 0x178   :  { %v299_v52 = vpop.f32.mrb[8].mxu0 }
 0x179   :  { %v327_v53 = vmax.f32 %v299_v52, 0.0  ;;  %768 = vrot.lane.b32.xlu0 %v767_v51, %s815_s20  ;;  %v609_v54 = vpop.f32.mrb[9].mxu0 }
 0x17b   :  { %v984_v55 = vpack.c.bf16 %v327_v53, %v326_v49 }
 0x17c   :  { %v304_v56 = vpop.f32.mrb[10].mxu0 }
 0x17d   :  { %v328_v57 = vmax.f32 %v304_v56, 0.0  ;;  %v612_v58 = vpop.f32.mrb[11].mxu0  ;;  %v389_v56 = vld [vmem:[%s1074_s2 + $0x18] sm:$0x1] }
 0x17f   :  { %v772_v59 = vpack.i.bf16 %v328_v57, %v327_v53  ;;  %v818_v53 = vmov 1.0  }
 0x180   :  { %v309_v60 = vpop.f32.mrb[12].mxu0 }
 0x181   :  { %v329_v61 = vmax.f32 %v309_v60, 0.0  ;;  %773 = vrot.lane.b32.xlu1 %v772_v59, %s815_s20  ;;  %v615_v62 = vpop.f32.mrb[13].mxu0 }
 0x183   :  { %v986_v63 = vpack.c.bf16 %v329_v61, %v328_v57 }
 0x184   :  { %v314_v0 = vpop.f32.mrb[14].mxu0 }
 0x185   :  { %v330_v1 = vmax.f32 %v314_v0, 0.0  ;;  %v618_v2 = vpop.f32.mrb[15].mxu0 }
 0x187   :  { %v777_v3 = vpack.i.bf16 %v330_v1, %v329_v61 }
 0x188   :  { %v319_v4 = vpop.f32.mrb[16].mxu0 }
 0x189   :  { %v331_v5 = vmax.f32 %v319_v4, 0.0  ;;  %778 = vrot.lane.b32.xlu0 %v777_v3, %s815_s20  ;;  %v621_v6 = vpop.f32.mrb[17].mxu0 }
 0x18b   :  { %348 = vrot.lane.b32.xlu1 %v331_v5, %s815_s20  ;;  %v671_v7 = vpack.c.bf16 %v331_v5, %v330_v1 }
 0x18d   :  { %783 = vrot.lane.b32.xlu0 %v762_v44, %s806_s24 }
 0x18f   :  { %788 = vrot.lane.b32.xlu1 %v767_v51, %s806_s24 }
 0x191   :  { %793 = vrot.lane.b32.xlu0 %v772_v59, %s806_s24 }
 0x193   :  { %798 = vrot.lane.b32.xlu1 %v777_v3, %s806_s24 }
 0x195   :  { %375 = vrot.lane.b32.xlu0 %v331_v5, %s806_s24 }
 0x197   :  { %490 = vperm.xlu1 %802, %v479_v11  }
 0x199   :  { %498 = vperm.xlu0 %803, %v479_v11  }
 0x19b   :  { %485 = vperm.xlu1 %802, %v478_v13  }
 0x19f   :  { %804 = vset.pattern.permute.xlu1 %v817_v12 }
 0x1a0   :  { %494 = vperm.xlu1 %804, %v478_v13  }
 0x1e3   :  { %v764_v14 = vpop.permute.xlu1 %763 }
 0x1e4   :  { %v766_v16 = vunpack.i.h.bf16 %v764_v14  ;;  %v765_v19 = vunpack.i.l.bf16 %v764_v14 }
 0x1e6   :  { %v642_v21 = vpack.c.bf16 %v766_v16, %v765_v19 }
 0x1e8   :  { %644 = vmatpush1.bf16.msk.msra.mxu1 %vm1006_vm1, %v642_v21 }
 0x1e9   :  { %645 = vmatprep.subr.bf16.mxu1 %v807_v10 }
 0x1eb   :  { %v769_v22 = vpop.permute.xlu0 %768 }
 0x1ec   :  { %v771_v23 = vunpack.i.h.bf16 %v769_v22  ;;  %v770_v24 = vunpack.i.l.bf16 %v769_v22 }
 0x1ee   :  { %v646_v25 = vpack.c.bf16 %v771_v23, %v770_v24 }
 0x1f0   :  { %648 = vmatpush1.bf16.msk.msra.mxu1 %vm1006_vm1, %v646_v25 }
 0x1f1   :  { %649 = vmatprep.subr.bf16.mxu1 %v807_v10 }
 0x1f3   :  { %v774_v26 = vpop.permute.xlu1 %773 }
 0x1f4   :  { %v776_v27 = vunpack.i.h.bf16 %v774_v26  ;;  %v775_v28 = vunpack.i.l.bf16 %v774_v26 }
 0x1f6   :  { %v650_v29 = vpack.c.bf16 %v776_v27, %v775_v28 }
 0x1f8   :  { %652 = vmatpush1.bf16.msk.msra.mxu1 %vm1006_vm1, %v650_v29 }
 0x1f9   :  { %653 = vmatprep.subr.bf16.mxu1 %v807_v10 }
 0x1fb   :  { %v779_v30 = vpop.permute.xlu0 %778 }
 0x1fc   :  { %v781_v31 = vunpack.i.h.bf16 %v779_v30  ;;  %v780_v32 = vunpack.i.l.bf16 %v779_v30 }
 0x1fd   :  { %v349_v34 = vpop.permute.xlu1 %348 }
 0x1fe   :  { %v654_v33 = vpack.c.bf16 %v781_v31, %v780_v32  ;;  %v658_v35 = vpack.c.bf16 %v323_v41, %v349_v34 }
 0x1ff   :  { %v784_v36 = vpop.permute.xlu0 %783 }
 0x200   :  { %656 = vmatpush1.bf16.msk.msra.mxu1 %vm1006_vm1, %v654_v33  ;;  %v786_v37 = vunpack.i.h.bf16 %v784_v36  ;;  %v785_v39 = vunpack.i.l.bf16 %v784_v36 }
 0x201   :  { %657 = vmatprep.subr.bf16.mxu1 %v807_v10  ;;  %v789_v38 = vpop.permute.xlu1 %788 }
 0x202   :  { %v674_v41 = vpack.c.bf16 %v786_v37, %v785_v39  ;;  %v791_v42 = vunpack.i.h.bf16 %v789_v38  ;;  %v790_v43 = vunpack.i.l.bf16 %v789_v38 }
 0x203   :  { %v794_v44 = vpop.permute.xlu0 %793 }
 0x204   :  { %660 = vmatpush1.bf16.msk.msra.mxu1 %vm659_vm8, %v658_v35  ;;  %v678_v45 = vpack.c.bf16 %v791_v42, %v790_v43  ;;  %v796_v46 = vunpack.i.h.bf16 %v794_v44  ;;  %v795_v15 = vunpack.i.l.bf16 %v794_v44 }
 0x205   :  { %661 = vmatprep.subr.bf16.mxu1 %v807_v10 }
 0x206   :  { %v682_v48 = vpack.c.bf16 %v796_v46, %v795_v15 }
 0x207   :  { %v376_v52 = vpop.permute.xlu0 %375 }
 0x208   :  { %663 = vmatpush1.bf16.msra.mxu1 %v982_v47  ;;  %v799_v47 = vpop.permute.xlu1 %798  ;;  %v690_v54 = vpack.c.bf16 %v818_v53, %v376_v52 }
 0x209   :  { %664 = vmatprep.subr.bf16.mxu1 %v807_v10  ;;  %v801_v49 = vunpack.i.h.bf16 %v799_v47  ;;  %v800_v50 = vunpack.i.l.bf16 %v799_v47 }
 0x20b   :  { %v686_v51 = vpack.c.bf16 %v801_v49, %v800_v50 }
 0x20c   :  { %666 = vmatpush1.bf16.msra.mxu1 %v984_v55  ;;  %v386_v55 = vld [vmem:[%s1074_s2] sm:$0xff] }
 0x20d   :  { %667 = vmatprep.subr.bf16.mxu1 %v807_v10 }
 0x210   :  { %669 = vmatpush1.bf16.msra.mxu1 %v986_v63 }
 0x211   :  { %670 = vmatprep.subr.bf16.mxu1 %v807_v10 }
 0x214   :  { %672 = vmatpush1.bf16.msra.mxu1 %v671_v7 }
 0x215   :  { %673 = vmatprep.subr.bf16.mxu1 %v807_v10 }
 0x216   :  { %v491_v18 = vpop.permute.xlu1 %490 }
 0x218   :  { %676 = vmatpush1.bf16.msk.msra.mxu1 %vm1038_vm7, %v674_v41  ;;  %v499_v60 = vpop.permute.xlu0 %498 }
 0x219   :  { %677 = vmatprep.subr.bf16.mxu1 %v807_v10  ;;  %v502_v2 = vsel %vm480_vm11, %v491_v18, %v499_v60 }
 0x21a   :  { %v486_v57 = vpop.permute.xlu1 %485 }
 0x21c   :  { %680 = vmatpush1.bf16.msk.msra.mxu1 %vm1038_vm7, %v678_v45 }
 0x21d   :  { %681 = vmatprep.subr.bf16.mxu1 %v807_v10 }
 0x21f   :  { %v495_v61 = vpop.permute.xlu1 %494 }
 0x220   :  { %684 = vmatpush1.bf16.msk.msra.mxu1 %vm1038_vm7, %v682_v48  ;;  %v501_v3 = vsel %vm480_vm11, %v486_v57, %v495_v61 }
 0x221   :  { %685 = vmatprep.subr.bf16.mxu1 %v807_v10 }
 0x224   :  { %688 = vmatpush1.bf16.msk.msra.mxu1 %vm1038_vm7, %v686_v51 }
 0x225   :  { %689 = vmatprep.subr.bf16.mxu1 %v807_v10  ;;  %v388_v10 = vld [vmem:[%s1074_s2 + $0x10] sm:$0x1] }
 0x228   :  { %692 = vmatpush1.bf16.msk.msra.mxu1 %vm691_vm10, %v690_v54 }
 0x22b   :  { %466 = vmatmul.mubr.f32.vlgmr.msra.gmra.mrb[0].mxu1 %v386_v55 }
 0x22c   :  { %552 = vmatprep.mubr.msk.f32.mxu1 %vm390_vm0, %v389_v56 }
 0x22f   :  { %471 = vmatmul.mubr.f32.gmra.mrb[2].mxu1 %v388_v10 }
 0x2fe   :  { %v467_v58 = vpop.f32.mrb[0].mxu1 }
 0x2ff   :  { %v469_v59 = vpop.f32.mrb[1].mxu1  ;;  %v476_v62 = vmax.f32 %v467_v58, 0.0 }
 0x301   :  { %v503_v5 = vmul.f32 %v501_v3, %v476_v62 }
 0x302   :  { %v472_v63 = vpop.f32.mrb[2].mxu1 }
 0x303   :  { %v477_v0 = vmax.f32 %v472_v63, 0.0  ;;  %v474_v1 = vpop.f32.mrb[3].mxu1 }
 0x305   :  { %v504_v4 = vmul.f32 %v502_v2, %v477_v0 }
 0x307   :  { %v505_v6 = vsel %vm397_vm9, %v504_v4, 0.0 }
 0x308   :  { %v506_v7 = vadd.f32 %v505_v6, %v503_v5 }
 0x30a   :  { %v507_v8 = vrot.slane %v506_v7, 4 }
 0x30c   :  { %v508_v9 = vadd.f32 %v507_v8, %v506_v7 }
 0x30e   :  { %v509_v11 = vrot.slane %v508_v9, 2 }
 0x310   :  { %v510_v12 = vadd.f32 %v509_v11, %v508_v9 }
 0x312   :  { %v511_v13 = vrot.slane %v510_v12, 1 }
 0x314   :  { %v512_v14 = vadd.f32 %v511_v13, %v510_v12 }
 0x316   :  { %513 = vst [vmem:[%s1076_s4] sm:$0x1] %v512_v14 }

</bundles_post_ra>
